<compile_context>
chip_gen: v6e
topology: v6e:2x2x1
jax: 0.10.0
libtpu: 0.0.40
codegen_flags: <defaults>
</compile_context>

<pallas_src>
import jax
import jax.numpy as jnp
from jax.experimental import pallas as pl
from jax.experimental.pallas import tpu as pltpu


# Below this many bytes, pallas_call launch overhead (~1 us) dominates the
# actual HBM copy time, so materialize=True falls back to a plain XLA copy.
_MIN_KERNEL_BYTES = 4 * 1024 * 1024

# Sharding of the large-copy path: 2 programs (both TensorCores on v7x) x
# 4 outstanding DMAs per program.
_NUM_PROGRAMS = 2
_CHUNKS_PER_PROGRAM = 4
_LANE = 128


def _identity_dma_kernel(x_hbm_ref, o_hbm_ref, copy_sem):
    """Whole-array HBM->HBM async copy. No VMEM staging, no vreg traffic."""
    cp = pltpu.make_async_copy(x_hbm_ref, o_hbm_ref, copy_sem)
    cp.start()
    cp.wait()


def _make_chunked_dma_kernel(chunk_rows: int, chunks_per_program: int):
    """HBM->HBM copy with `chunks_per_program` DMAs in flight per program.

    The grid axis ("parallel") shards DMA issue across TensorCores on v7x;
    multiple outstanding descriptors hide per-DMA setup latency on all
    generations (v5e/v6e/v7x).
    """

    def kernel(x_hbm_ref, o_hbm_ref, sems):
        pid = pl.program_id(0)
        base = pid * chunks_per_program
        copies = []
        for c in range(chunks_per_program):
            start = pl.multiple_of((base + c) * chunk_rows, chunk_rows)
            cp = pltpu.make_async_copy(
                x_hbm_ref.at[pl.ds(start, chunk_rows)],
                o_hbm_ref.at[pl.ds(start, chunk_rows)],
                sems.at[c],
            )
            cp.start()
            copies.append(cp)
        for cp in copies:
            cp.wait()

    return kernel


def _copy_cost(nbytes: int) -> pl.CostEstimate:
    # Pure copy: read + write nbytes, no FLOPs, no transcendentals.
    return pl.CostEstimate(flops=0, transcendentals=0, bytes_accessed=2 * nbytes)


def _pallas_copy_whole(x: jnp.ndarray) -> jnp.ndarray:
    """Single whole-array HBM->HBM DMA (shape/dtype agnostic fallback)."""
    return pl.pallas_call(
        _identity_dma_kernel,
        out_shape=jax.ShapeDtypeStruct(x.shape, x.dtype),
        in_specs=[pl.BlockSpec(memory_space=pl.ANY)],
        out_specs=pl.BlockSpec(memory_space=pl.ANY),
        scratch_shapes=[pltpu.SemaphoreType.DMA(())],
        cost_estimate=_copy_cost(x.size * x.dtype.itemsize),
    )(x)


def _pallas_copy_chunked(x: jnp.ndarray) -> jnp.ndarray:
    """HBM->HBM copy sharded over 2 programs x 4 outstanding DMAs each."""
    total_chunks = _NUM_PROGRAMS * _CHUNKS_PER_PROGRAM
    rows = x.size // _LANE
    chunk_rows = rows // total_chunks
    # Metadata-only reshape of a contiguous array to a lane-dense slab.
    flat = x.reshape(rows, _LANE)
    out = pl.pallas_call(
        _make_chunked_dma_kernel(chunk_rows, _CHUNKS_PER_PROGRAM),
        out_shape=jax.ShapeDtypeStruct((rows, _LANE), x.dtype),
        grid=(_NUM_PROGRAMS,),
        in_specs=[pl.BlockSpec(memory_space=pl.ANY)],
        out_specs=pl.BlockSpec(memory_space=pl.ANY),
        scratch_shapes=[pltpu.SemaphoreType.DMA((_CHUNKS_PER_PROGRAM,))],
        compiler_params=pltpu.CompilerParams(
            dimension_semantics=("parallel",)),
        cost_estimate=_copy_cost(x.size * x.dtype.itemsize),
    )(flat)
    return out.reshape(x.shape)


def identity(x: jnp.ndarray, *, materialize: bool = False,
             min_kernel_bytes: int = _MIN_KERNEL_BYTES) -> jnp.ndarray:
    """Forward pass of Identity: returns x unchanged (same shape, same dtype).

    materialize=False (default): pure pass-through — the truly optimal
        Identity (zero HBM traffic, zero kernel launch). Combine with jit
        buffer donation if the caller wants output-buffer semantics for free.
    materialize=True: return a fresh buffer.
        * below `min_kernel_bytes`: plain XLA copy (Pallas launch overhead
          would dominate at these sizes);
        * otherwise: HBM->HBM DMA inside a Pallas kernel at the copy
          roofline, sharded across TensorCores with multiple outstanding
          DMAs when the size divides cleanly.
    """
    if not materialize:
        return x

    nbytes = x.size * x.dtype.itemsize
    if nbytes < min_kernel_bytes:
        return jnp.copy(x)

    rows_ok = (
        x.size % _LANE == 0
        and (x.size // _LANE) % (_NUM_PROGRAMS * _CHUNKS_PER_PROGRAM) == 0
    )
    if rows_ok:
        return _pallas_copy_chunked(x)
    return _pallas_copy_whole(x)


if __name__ == "__main__":
    key = jax.random.PRNGKey(0)

    # Small NCHW input consistent with a conv-cell op: batch=2, channels=4, 16x16.
    x = jax.random.normal(key, (2, 4, 16, 16), dtype=jnp.float32)

    # 1) Default (production) path: pure pass-through, no kernel.
    y_pass = identity(x)
    assert y_pass is x, "default Identity should be a pure pass-through"

    # 2) materialize=True on a tiny tensor: below the size threshold the
    #    wrapper uses a plain XLA copy (no Pallas launch overhead).
    y_small = identity(x, materialize=True)
    jax.block_until_ready(y_small)
    assert y_small.shape == x.shape and y_small.dtype == x.dtype
    assert bool(jnp.all(y_small == x)), "small-copy path differs from input"

    # 3) Pallas chunked DMA path (min_kernel_bytes=0 to exercise it at a
    #    small, test-friendly size: 8*4*32*32 f32 = 128 KiB, lane-divisible).
    xb = jax.random.normal(jax.random.PRNGKey(1), (8, 4, 32, 32), dtype=jnp.float32)
    y_chunked = identity(xb, materialize=True, min_kernel_bytes=0)
    jax.block_until_ready(y_chunked)
    assert y_chunked.shape == xb.shape and y_chunked.dtype == xb.dtype
    assert bool(jnp.all(y_chunked == xb)), "chunked DMA path differs from input"

    # 4) Pallas whole-array DMA fallback (shape not divisible into chunks).
    xc = jax.random.normal(jax.random.PRNGKey(2), (3, 5, 7, 9), dtype=jnp.float32)
    y_whole = identity(xc, materialize=True, min_kernel_bytes=0)
    jax.block_until_ready(y_whole)
    assert y_whole.shape == xc.shape and y_whole.dtype == xc.dtype
    assert bool(jnp.all(y_whole == xc)), "whole-array DMA path differs from input"

    print("KERNEL_OK")
</pallas_src>

<mosaic_0001>
module attributes {stable_mosaic.version = 11 : i64} {
  func.func @kernel(%arg0: i32, %arg1: memref<256x128xf32, #tpu.memory_space<any>>, %arg2: memref<256x128xf32, #tpu.memory_space<any>>, %arg3: memref<4x!tpu.dma_semaphore, #tpu.memory_space<semaphore_mem>>) attributes {dimension_semantics = [#tpu.dimension_semantics<parallel>], iteration_bounds = array<i64: 2>, scalar_prefetch = 0 : i64, scratch_operands = 1 : i64, tpu.core_type = #tpu.core_type<tc>, window_params = [{}, {}]} {
    %c4_i32 = arith.constant 4 : i32
    %0 = arith.muli %arg0, %c4_i32 : i32
    %c0_i32 = arith.constant 0 : i32
    %1 = arith.addi %0, %c0_i32 : i32
    %c32_i32 = arith.constant 32 : i32
    %2 = arith.muli %1, %c32_i32 : i32
    %3 = tpu.assume_multiple %2, 32 : i32
    %c0_i32_0 = arith.constant 0 : i32
    %c0_i32_1 = arith.constant 0 : i32
    %4 = tpu.memref_slice %arg1[%3, %c0_i32_1] : memref<256x128xf32, #tpu.memory_space<any>> -> memref<32x128xf32, #tpu.memory_space<any>>
    %c0_i32_2 = arith.constant 0 : i32
    %5 = tpu.memref_slice %arg2[%3, %c0_i32_2] : memref<256x128xf32, #tpu.memory_space<any>> -> memref<32x128xf32, #tpu.memory_space<any>>
    %6 = tpu.memref_slice %arg3[%c0_i32_0] : memref<4x!tpu.dma_semaphore, #tpu.memory_space<semaphore_mem>> -> memref<1x!tpu.dma_semaphore, #tpu.memory_space<semaphore_mem>>
    %7 = tpu.memref_squeeze %6 : memref<1x!tpu.dma_semaphore, #tpu.memory_space<semaphore_mem>> -> memref<!tpu.dma_semaphore, #tpu.memory_space<semaphore_mem>>
    tpu.enqueue_dma source(%4 : memref<32x128xf32, #tpu.memory_space<any>>) target(%5 : memref<32x128xf32, #tpu.memory_space<any>>) target_semaphore(%7 : memref<!tpu.dma_semaphore, #tpu.memory_space<semaphore_mem>>)
    %c1_i32 = arith.constant 1 : i32
    %8 = arith.addi %0, %c1_i32 : i32
    %c32_i32_3 = arith.constant 32 : i32
    %9 = arith.muli %8, %c32_i32_3 : i32
    %10 = tpu.assume_multiple %9, 32 : i32
    %c1_i32_4 = arith.constant 1 : i32
    %c0_i32_5 = arith.constant 0 : i32
    %11 = tpu.memref_slice %arg1[%10, %c0_i32_5] : memref<256x128xf32, #tpu.memory_space<any>> -> memref<32x128xf32, #tpu.memory_space<any>>
    %c0_i32_6 = arith.constant 0 : i32
    %12 = tpu.memref_slice %arg2[%10, %c0_i32_6] : memref<256x128xf32, #tpu.memory_space<any>> -> memref<32x128xf32, #tpu.memory_space<any>>
    %13 = tpu.memref_slice %arg3[%c1_i32_4] : memref<4x!tpu.dma_semaphore, #tpu.memory_space<semaphore_mem>> -> memref<1x!tpu.dma_semaphore, #tpu.memory_space<semaphore_mem>>
    %14 = tpu.memref_squeeze %13 : memref<1x!tpu.dma_semaphore, #tpu.memory_space<semaphore_mem>> -> memref<!tpu.dma_semaphore, #tpu.memory_space<semaphore_mem>>
    tpu.enqueue_dma source(%11 : memref<32x128xf32, #tpu.memory_space<any>>) target(%12 : memref<32x128xf32, #tpu.memory_space<any>>) target_semaphore(%14 : memref<!tpu.dma_semaphore, #tpu.memory_space<semaphore_mem>>)
    %c2_i32 = arith.constant 2 : i32
    %15 = arith.addi %0, %c2_i32 : i32
    %c32_i32_7 = arith.constant 32 : i32
    %16 = arith.muli %15, %c32_i32_7 : i32
    %17 = tpu.assume_multiple %16, 32 : i32
    %c2_i32_8 = arith.constant 2 : i32
    %c0_i32_9 = arith.constant 0 : i32
    %18 = tpu.memref_slice %arg1[%17, %c0_i32_9] : memref<256x128xf32, #tpu.memory_space<any>> -> memref<32x128xf32, #tpu.memory_space<any>>
    %c0_i32_10 = arith.constant 0 : i32
    %19 = tpu.memref_slice %arg2[%17, %c0_i32_10] : memref<256x128xf32, #tpu.memory_space<any>> -> memref<32x128xf32, #tpu.memory_space<any>>
    %20 = tpu.memref_slice %arg3[%c2_i32_8] : memref<4x!tpu.dma_semaphore, #tpu.memory_space<semaphore_mem>> -> memref<1x!tpu.dma_semaphore, #tpu.memory_space<semaphore_mem>>
    %21 = tpu.memref_squeeze %20 : memref<1x!tpu.dma_semaphore, #tpu.memory_space<semaphore_mem>> -> memref<!tpu.dma_semaphore, #tpu.memory_space<semaphore_mem>>
    tpu.enqueue_dma source(%18 : memref<32x128xf32, #tpu.memory_space<any>>) target(%19 : memref<32x128xf32, #tpu.memory_space<any>>) target_semaphore(%21 : memref<!tpu.dma_semaphore, #tpu.memory_space<semaphore_mem>>)
    %c3_i32 = arith.constant 3 : i32
    %22 = arith.addi %0, %c3_i32 : i32
    %c32_i32_11 = arith.constant 32 : i32
    %23 = arith.muli %22, %c32_i32_11 : i32
    %24 = tpu.assume_multiple %23, 32 : i32
    %c3_i32_12 = arith.constant 3 : i32
    %c0_i32_13 = arith.constant 0 : i32
    %25 = tpu.memref_slice %arg1[%24, %c0_i32_13] : memref<256x128xf32, #tpu.memory_space<any>> -> memref<32x128xf32, #tpu.memory_space<any>>
    %c0_i32_14 = arith.constant 0 : i32
    %26 = tpu.memref_slice %arg2[%24, %c0_i32_14] : memref<256x128xf32, #tpu.memory_space<any>> -> memref<32x128xf32, #tpu.memory_space<any>>
    %27 = tpu.memref_slice %arg3[%c3_i32_12] : memref<4x!tpu.dma_semaphore, #tpu.memory_space<semaphore_mem>> -> memref<1x!tpu.dma_semaphore, #tpu.memory_space<semaphore_mem>>
    %28 = tpu.memref_squeeze %27 : memref<1x!tpu.dma_semaphore, #tpu.memory_space<semaphore_mem>> -> memref<!tpu.dma_semaphore, #tpu.memory_space<semaphore_mem>>
    tpu.enqueue_dma source(%25 : memref<32x128xf32, #tpu.memory_space<any>>) target(%26 : memref<32x128xf32, #tpu.memory_space<any>>) target_semaphore(%28 : memref<!tpu.dma_semaphore, #tpu.memory_space<semaphore_mem>>)
    %c0_i32_15 = arith.constant 0 : i32
    %c0_i32_16 = arith.constant 0 : i32
    %29 = tpu.memref_slice %arg1[%3, %c0_i32_16] : memref<256x128xf32, #tpu.memory_space<any>> -> memref<32x128xf32, #tpu.memory_space<any>>
    %c0_i32_17 = arith.constant 0 : i32
    %30 = tpu.memref_slice %arg2[%3, %c0_i32_17] : memref<256x128xf32, #tpu.memory_space<any>> -> memref<32x128xf32, #tpu.memory_space<any>>
    %31 = tpu.memref_slice %arg3[%c0_i32_15] : memref<4x!tpu.dma_semaphore, #tpu.memory_space<semaphore_mem>> -> memref<1x!tpu.dma_semaphore, #tpu.memory_space<semaphore_mem>>
    %32 = tpu.memref_squeeze %31 : memref<1x!tpu.dma_semaphore, #tpu.memory_space<semaphore_mem>> -> memref<!tpu.dma_semaphore, #tpu.memory_space<semaphore_mem>>
    tpu.wait_dma2 semaphore(%32 : memref<!tpu.dma_semaphore, #tpu.memory_space<semaphore_mem>>) src(%29 : memref<32x128xf32, #tpu.memory_space<any>>) dst(%30 : memref<32x128xf32, #tpu.memory_space<any>>)
    %c1_i32_18 = arith.constant 1 : i32
    %c0_i32_19 = arith.constant 0 : i32
    %33 = tpu.memref_slice %arg1[%10, %c0_i32_19] : memref<256x128xf32, #tpu.memory_space<any>> -> memref<32x128xf32, #tpu.memory_space<any>>
    %c0_i32_20 = arith.constant 0 : i32
    %34 = tpu.memref_slice %arg2[%10, %c0_i32_20] : memref<256x128xf32, #tpu.memory_space<any>> -> memref<32x128xf32, #tpu.memory_space<any>>
    %35 = tpu.memref_slice %arg3[%c1_i32_18] : memref<4x!tpu.dma_semaphore, #tpu.memory_space<semaphore_mem>> -> memref<1x!tpu.dma_semaphore, #tpu.memory_space<semaphore_mem>>
    %36 = tpu.memref_squeeze %35 : memref<1x!tpu.dma_semaphore, #tpu.memory_space<semaphore_mem>> -> memref<!tpu.dma_semaphore, #tpu.memory_space<semaphore_mem>>
    tpu.wait_dma2 semaphore(%36 : memref<!tpu.dma_semaphore, #tpu.memory_space<semaphore_mem>>) src(%33 : memref<32x128xf32, #tpu.memory_space<any>>) dst(%34 : memref<32x128xf32, #tpu.memory_space<any>>)
    %c2_i32_21 = arith.constant 2 : i32
    %c0_i32_22 = arith.constant 0 : i32
    %37 = tpu.memref_slice %arg1[%17, %c0_i32_22] : memref<256x128xf32, #tpu.memory_space<any>> -> memref<32x128xf32, #tpu.memory_space<any>>
    %c0_i32_23 = arith.constant 0 : i32
    %38 = tpu.memref_slice %arg2[%17, %c0_i32_23] : memref<256x128xf32, #tpu.memory_space<any>> -> memref<32x128xf32, #tpu.memory_space<any>>
    %39 = tpu.memref_slice %arg3[%c2_i32_21] : memref<4x!tpu.dma_semaphore, #tpu.memory_space<semaphore_mem>> -> memref<1x!tpu.dma_semaphore, #tpu.memory_space<semaphore_mem>>
    %40 = tpu.memref_squeeze %39 : memref<1x!tpu.dma_semaphore, #tpu.memory_space<semaphore_mem>> -> memref<!tpu.dma_semaphore, #tpu.memory_space<semaphore_mem>>
    tpu.wait_dma2 semaphore(%40 : memref<!tpu.dma_semaphore, #tpu.memory_space<semaphore_mem>>) src(%37 : memref<32x128xf32, #tpu.memory_space<any>>) dst(%38 : memref<32x128xf32, #tpu.memory_space<any>>)
    %c3_i32_24 = arith.constant 3 : i32
    %c0_i32_25 = arith.constant 0 : i32
    %41 = tpu.memref_slice %arg1[%24, %c0_i32_25] : memref<256x128xf32, #tpu.memory_space<any>> -> memref<32x128xf32, #tpu.memory_space<any>>
    %c0_i32_26 = arith.constant 0 : i32
    %42 = tpu.memref_slice %arg2[%24, %c0_i32_26] : memref<256x128xf32, #tpu.memory_space<any>> -> memref<32x128xf32, #tpu.memory_space<any>>
    %43 = tpu.memref_slice %arg3[%c3_i32_24] : memref<4x!tpu.dma_semaphore, #tpu.memory_space<semaphore_mem>> -> memref<1x!tpu.dma_semaphore, #tpu.memory_space<semaphore_mem>>
    %44 = tpu.memref_squeeze %43 : memref<1x!tpu.dma_semaphore, #tpu.memory_space<semaphore_mem>> -> memref<!tpu.dma_semaphore, #tpu.memory_space<semaphore_mem>>
    tpu.wait_dma2 semaphore(%44 : memref<!tpu.dma_semaphore, #tpu.memory_space<semaphore_mem>>) src(%41 : memref<32x128xf32, #tpu.memory_space<any>>) dst(%42 : memref<32x128xf32, #tpu.memory_space<any>>)
    return
  }
}

</mosaic_0001>

<bundles_post_ra>
// kernel: tpu_custom_call.1
= control target key start
LH: loop header
LB: loop body
LE: loop exit
PB: predicated region body
PF: predicated region fallthrough
CT: control target
= control target key end

     0   :  { %s210_s6 = smov 0   ;;  %s225_s0 = inlined_call_operand.hbm [shape: f32[256,128], index: 0, kind: input, shape index: {}]   ;;  %s226_s1 = inlined_call_operand.hbm [shape: f32[256,128], index: 1, kind: output, shape index: {}]  }
   0x1 LB: > { %s156_s7 = sshll.u32 %s192_s6, 11  ;;  %s194_s14 = smov [#allocation2]   ;;  %s192_s6 = sphi %s210_s6, %s11_s6  }
   0x2   : > { %s16_s10 = scalar_lea.hbm %s225_s0, %s156_s7  ;;  %s18_s13 = scalar_lea.hbm %s226_s1, %s156_s7 }
   0x3   : > { %s195_s15 = smov 131072   ;;  %s196_s16 = smov 0  }
   0x4   : > { %25 = dma.general %s16_s10, 512, %s18_s13, %s194_s14, %s195_s15, [#allocation4], %s196_s16, 0  }
   0x5   : > { %s111_s17 = scalar_lea.hbm %s16_s10, 512  ;;  %s115_s18 = scalar_lea.hbm %s18_s13, 512 }
   0x6   : > { %s119_s19 = scalar_lea.hbm %s16_s10, 1024  ;;  %s197_s20 = smov [#allocation2 + $0x1]  }
   0x7   : > { %39 = dma.general %s111_s17, 512, %s115_s18, %s197_s20, %s195_s15, [#allocation6], %s196_s16, 0  }
   0x8   : > { %s123_s21 = scalar_lea.hbm %s18_s13, 1024  ;;  %s198_s22 = smov [#allocation2 + $0x2]  }
   0x9   : > { %53 = dma.general %s119_s19, 512, %s123_s21, %s198_s22, %s195_s15, [#allocation8], %s196_s16, 0  }
   0xa   : > { %s127_s23 = scalar_lea.hbm %s16_s10, 1536  ;;  %s131_s24 = scalar_lea.hbm %s18_s13, 1536 }
   0xb   : > { %s199_s25 = smov [#allocation2 + $0x3]  }
   0xc   : > { %67 = dma.general %s127_s23, 512, %s131_s24, %s199_s25, %s195_s15, [#allocation10], %s196_s16, 0  }
   0xd   : > { %182 = dma.done.wait [#allocation2], 512 }
   0xe   : > { %183 = vsyncadd [#allocation2], 4294966784 }
   0xf   : > { %184 = dma.done.wait [#allocation2 + $0x1], 512 }
  0x10   : > { %185 = vsyncadd [#allocation2 + $0x1], 4294966784 }
  0x11   : > { %186 = dma.done.wait [#allocation2 + $0x2], 512 }
  0x12   : > { %187 = vsyncadd [#allocation2 + $0x2], 4294966784 }
  0x13   : > { %188 = dma.done.wait [#allocation2 + $0x3], 512 }
  0x14   : > { %189 = vsyncadd [#allocation2 + $0x3], 4294966784  ;;  %s11_s6 = sadd.s32 1, %s192_s6  }
  0x15   : > { %p8_p0 = scmp.ge.s32.totalorder %s11_s6, 2  }
  0x17   :  { %10 = sbr.rel (!%p8_p0) target bundleno = 1 (0x1), region = 33 }
  0x1c   :  { %77 = vsyncmov [#allocation2] }
  0x1f   :  { %s78_s26 = vpop.sfrf %77 }
  0x20   :  { %p152_p1 = scmp.ne.s32.totalorder %s78_s26, 0 }
  0x22   :  { %82 = shalt.err (%p152_p1)  }
  0x23   :  { %84 = vsyncmov [#allocation2 + $0x1] }
  0x26   :  { %s85_s27 = vpop.sfrf %84 }
  0x27   :  { %p153_p2 = scmp.ne.s32.totalorder %s85_s27, 0 }
  0x29   :  { %89 = shalt.err (%p153_p2)  }
  0x2a   :  { %91 = vsyncmov [#allocation2 + $0x2] }
  0x2d   :  { %s92_s28 = vpop.sfrf %91 }
  0x2e   :  { %p154_p3 = scmp.ne.s32.totalorder %s92_s28, 0 }
  0x30   :  { %96 = shalt.err (%p154_p3)  }
  0x31   :  { %98 = vsyncmov [#allocation2 + $0x3] }
  0x34   :  { %s99_s29 = vpop.sfrf %98 }
  0x35   :  { %p155_p4 = scmp.ne.s32.totalorder %s99_s29, 0 }
  0x37   :  { %103 = shalt.err (%p155_p4)  }

</bundles_post_ra>
